<compile_context>
chip_gen: v5e
topology: v5e:2x2
jax: 0.10.0
libtpu: 0.0.40
codegen_flags: <defaults>
</compile_context>

<pallas_src>
import jax
import jax.numpy as jnp
from jax.experimental import pallas as pl
from jax.experimental.pallas import tpu as pltpu


def _round_up(x, m):
    return ((x + m - 1) // m) * m


def _critic_kernel(s_ref, a_ref, w1s_ref, w1a_ref, b1_ref, w2_ref, b2_ref,
                   w3_ref, b3_ref, o_ref):
    cdt = w1s_ref.dtype                      # f32 by default, bf16 if use_bf16

    # fc1 + ReLU: two accumulated MXU pushes (state block + action block of w1)
    h = jnp.dot(s_ref[...].astype(cdt), w1s_ref[...],
                preferred_element_type=jnp.float32)
    h = h + jnp.dot(a_ref[...].astype(cdt), w1a_ref[...],
                    preferred_element_type=jnp.float32)
    h = jnp.maximum(h + b1_ref[...], 0.0)    # b1 is [1, H_pad] -> broadcasts over rows

    # fc2 + ReLU
    h = jnp.dot(h.astype(cdt), w2_ref[...], preferred_element_type=jnp.float32)
    h = jnp.maximum(h + b2_ref[...], 0.0)

    # fc3: H_pad -> 1 contraction on VPU (mul) + XLU (lane reduce); no MXU, no padding.
    q = jnp.sum(h * w3_ref[...], axis=-1, keepdims=True) + b3_ref[...]

    o_ref[...] = q.astype(o_ref.dtype)       # (TB, 1) store; tiny writeback stream


def prepare_params(w1, b1, w2, b2, w3, b3, n_states, *, use_bf16=False):
    """One-time (out of the hot path) weight prep:
       - w*: [in_features, out_features] layout (transposed vs. nn.Linear.weight)
       - hidden width zero-padded to a multiple of 128 (full (8,128) vregs)
       - w1 split into its state / action row blocks (concat folded into the kernel)
       - optional bf16 cast of the MXU operands (f32 accumulation kept in-kernel).
    """
    n_in, H = w1.shape
    H_pad = _round_up(H, 128)
    pad_h = H_pad - H

    w1p = jnp.pad(w1.astype(jnp.float32), ((0, 0), (0, pad_h)))
    w2p = jnp.pad(w2.astype(jnp.float32), ((0, pad_h), (0, pad_h)))
    b1p = jnp.pad(b1.astype(jnp.float32), ((0, pad_h),)).reshape(1, H_pad)
    b2p = jnp.pad(b2.astype(jnp.float32), ((0, pad_h),)).reshape(1, H_pad)
    # w3: [H, 1] -> lane-major row [1, H_pad]; padded entries are exactly 0.
    w3p = jnp.pad(w3.astype(jnp.float32).reshape(1, H), ((0, 0), (0, pad_h)))
    b3p = b3.astype(jnp.float32).reshape(1, 1)

    cdt = jnp.bfloat16 if use_bf16 else jnp.float32
    w1s = w1p[:n_states].astype(cdt)         # [n_states, H_pad]
    w1a = w1p[n_states:].astype(cdt)         # [n_actions, H_pad]
    w2p = w2p.astype(cdt)

    return (w1s, w1a, b1p, w2p, b2p, w3p, b3p)


def critic_net_forward(state, action, params, *, tile_b=2048):
    """state: [B, n_states]; action: [B, n_actions]; params from prepare_params().
       Returns q: [B, 1] (float32)."""
    w1s, w1a, b1, w2, b2, w3, b3 = params
    n_states = w1s.shape[0]
    n_actions = w1a.shape[0]
    H_pad = w2.shape[1]

    state = state.astype(jnp.float32)
    action = action.astype(jnp.float32)
    B = state.shape[0]

    # ---- batch tiling: big tiles (step-overhead bound otherwise), >= 2 grid steps
    #      when possible so v7x's 2 TensorCores both get work ('parallel' axis). ----
    B8 = _round_up(B, 8)
    TB = min(tile_b, B8)
    if B > 8 and (B8 // TB) < 2 and TB > 8:
        TB = max(8, _round_up(B8 // 2, 8))
    B_pad = _round_up(B, TB)

    if B_pad != B:
        state = jnp.pad(state, ((0, B_pad - B), (0, 0)))
        action = jnp.pad(action, ((0, B_pad - B), (0, 0)))

    grid = (B_pad // TB,)

    out = pl.pallas_call(
        _critic_kernel,
        out_shape=jax.ShapeDtypeStruct((B_pad, 1), jnp.float32),
        grid=grid,
        in_specs=[
            # activations: tiled over the batch grid axis
            pl.BlockSpec((TB, n_states), lambda i: (i, 0)),
            pl.BlockSpec((TB, n_actions), lambda i: (i, 0)),
            # weights / biases: same block every step -> stay resident in VMEM
            pl.BlockSpec((n_states, H_pad), lambda i: (0, 0)),
            pl.BlockSpec((n_actions, H_pad), lambda i: (0, 0)),
            pl.BlockSpec((1, H_pad), lambda i: (0, 0)),
            pl.BlockSpec((H_pad, H_pad), lambda i: (0, 0)),
            pl.BlockSpec((1, H_pad), lambda i: (0, 0)),
            pl.BlockSpec((1, H_pad), lambda i: (0, 0)),
            pl.BlockSpec((1, 1), lambda i: (0, 0)),
        ],
        # (TB, 1): last block dim equals the full array dim, so this is legal and the
        # writeback is 4 B/row instead of 512 B/row.
        out_specs=pl.BlockSpec((TB, 1), lambda i: (i, 0)),
        compiler_params=pltpu.CompilerParams(
            dimension_semantics=("parallel",),   # shards batch tiles across TCs on v7x
        ),
    )(state, action, w1s, w1a, b1, w2, b2, w3, b3)

    return out[:B]


def init_params(key, n_states, n_actions, n_hidden):
    """Deterministic init mimicking nn.Linear's U(-1/sqrt(fan_in), 1/sqrt(fan_in)).
       Weights stored transposed: [in_features, out_features]."""
    k1, k2, k3, k4, k5, k6 = jax.random.split(key, 6)
    n_in = n_states + n_actions
    bd1 = 1.0 / jnp.sqrt(n_in)
    bd2 = 1.0 / jnp.sqrt(n_hidden)
    bd3 = 1.0 / jnp.sqrt(n_hidden)
    w1 = jax.random.uniform(k1, (n_in, n_hidden), jnp.float32, -bd1, bd1)
    b1 = jax.random.uniform(k2, (n_hidden,), jnp.float32, -bd1, bd1)
    w2 = jax.random.uniform(k3, (n_hidden, n_hidden), jnp.float32, -bd2, bd2)
    b2 = jax.random.uniform(k4, (n_hidden,), jnp.float32, -bd2, bd2)
    w3 = jax.random.uniform(k5, (n_hidden, 1), jnp.float32, -bd3, bd3)
    b3 = jax.random.uniform(k6, (1,), jnp.float32, -bd3, bd3)
    return w1, b1, w2, b2, w3, b3


if __name__ == "__main__":
    key = jax.random.PRNGKey(0)
    k_params, k_s, k_a = jax.random.split(key, 3)

    batch = 2
    n_states = 8
    n_actions = 2
    n_hidden = 64

    w1, b1, w2, b2, w3, b3 = init_params(k_params, n_states, n_actions, n_hidden)
    state = jax.random.normal(k_s, (batch, n_states), jnp.float32)
    action = jax.random.normal(k_a, (batch, n_actions), jnp.float32)

    # one-time weight prep (hidden-width padding, w1 split, layout), out of the hot path
    params = prepare_params(w1, b1, w2, b2, w3, b3, n_states, use_bf16=False)

    q = critic_net_forward(state, action, params)
    q = jax.block_until_ready(q)

    # pure-JAX reference check (matches the PyTorch forward)
    x_ref = jnp.concatenate([state, action], axis=1)
    h_ref = jnp.maximum(x_ref @ w1 + b1, 0.0)
    h_ref = jnp.maximum(h_ref @ w2 + b2, 0.0)
    q_ref = h_ref @ w3 + b3

    assert q.shape == (batch, 1), q.shape
    assert jnp.allclose(q, q_ref, atol=1e-5), "mismatch vs reference"

    print("KERNEL_OK")
</pallas_src>

<mosaic_0001>
module attributes {stable_mosaic.version = 11 : i64} {
  func.func @_critic_kernel(%arg0: i32, %arg1: memref<8x8xf32, #tpu.memory_space<vmem>>, %arg2: memref<8x2xf32, #tpu.memory_space<vmem>>, %arg3: memref<8x128xf32, #tpu.memory_space<vmem>>, %arg4: memref<2x128xf32, #tpu.memory_space<vmem>>, %arg5: memref<1x128xf32, #tpu.memory_space<vmem>>, %arg6: memref<128x128xf32, #tpu.memory_space<vmem>>, %arg7: memref<1x128xf32, #tpu.memory_space<vmem>>, %arg8: memref<1x128xf32, #tpu.memory_space<vmem>>, %arg9: memref<1x1xf32, #tpu.memory_space<vmem>>, %arg10: memref<8x1xf32, #tpu.memory_space<vmem>>) attributes {dimension_semantics = [#tpu.dimension_semantics<parallel>], iteration_bounds = array<i64: 1>, scalar_prefetch = 0 : i64, scratch_operands = 0 : i64, tpu.core_type = #tpu.core_type<tc>, window_params = [{transform_indices = @transform_0, window_bounds = array<i64: 8, 8>}, {transform_indices = @transform_1, window_bounds = array<i64: 8, 2>}, {pipeline_mode = #tpu.pipeline_mode<synchronous>, transform_indices = @transform_2, window_bounds = array<i64: 8, 128>}, {pipeline_mode = #tpu.pipeline_mode<synchronous>, transform_indices = @transform_3, window_bounds = array<i64: 2, 128>}, {pipeline_mode = #tpu.pipeline_mode<synchronous>, transform_indices = @transform_4, window_bounds = array<i64: 1, 128>}, {pipeline_mode = #tpu.pipeline_mode<synchronous>, transform_indices = @transform_5, window_bounds = array<i64: 128, 128>}, {pipeline_mode = #tpu.pipeline_mode<synchronous>, transform_indices = @transform_6, window_bounds = array<i64: 1, 128>}, {pipeline_mode = #tpu.pipeline_mode<synchronous>, transform_indices = @transform_7, window_bounds = array<i64: 1, 128>}, {pipeline_mode = #tpu.pipeline_mode<synchronous>, transform_indices = @transform_8, window_bounds = array<i64: 1, 1>}, {transform_indices = @transform_9, window_bounds = array<i64: 8, 1>}]} {
    %c0 = arith.constant 0 : index
    %c0_0 = arith.constant 0 : index
    %0 = vector.load %arg1[%c0, %c0_0] : memref<8x8xf32, #tpu.memory_space<vmem>>, vector<8x8xf32>
    %c0_1 = arith.constant 0 : index
    %c0_2 = arith.constant 0 : index
    %1 = vector.load %arg3[%c0_1, %c0_2] : memref<8x128xf32, #tpu.memory_space<vmem>>, vector<8x128xf32>
    %cst = arith.constant dense<0.000000e+00> : vector<8x128xf32>
    %2 = tpu.matmul %0, %1, %cst {dimension_numbers = #tpu.dot_dimension_numbers<[1], [0], [0], [1], [0, 0, 1, 1], [], []>} : vector<8x8xf32>, vector<8x128xf32>, vector<8x128xf32> -> vector<8x128xf32>
    %c0_3 = arith.constant 0 : index
    %c0_4 = arith.constant 0 : index
    %3 = vector.load %arg2[%c0_3, %c0_4] : memref<8x2xf32, #tpu.memory_space<vmem>>, vector<8x2xf32>
    %c0_5 = arith.constant 0 : index
    %c0_6 = arith.constant 0 : index
    %4 = vector.load %arg4[%c0_5, %c0_6] : memref<2x128xf32, #tpu.memory_space<vmem>>, vector<2x128xf32>
    %cst_7 = arith.constant dense<0.000000e+00> : vector<8x128xf32>
    %5 = tpu.matmul %3, %4, %cst_7 {dimension_numbers = #tpu.dot_dimension_numbers<[1], [0], [0], [1], [0, 0, 1, 1], [], []>} : vector<8x2xf32>, vector<2x128xf32>, vector<8x128xf32> -> vector<8x128xf32>
    %6 = arith.addf %2, %5 : vector<8x128xf32>
    %c0_8 = arith.constant 0 : index
    %c0_9 = arith.constant 0 : index
    %7 = vector.load %arg5[%c0_8, %c0_9] : memref<1x128xf32, #tpu.memory_space<vmem>>, vector<1x128xf32>
    %8 = vector.broadcast %7 : vector<1x128xf32> to vector<8x128xf32>
    %9 = arith.addf %6, %8 : vector<8x128xf32>
    %cst_10 = arith.constant 0.000000e+00 : f32
    %10 = vector.broadcast %cst_10 : f32 to vector<8x128xf32>
    %11 = arith.maximumf %9, %10 : vector<8x128xf32>
    %c0_11 = arith.constant 0 : index
    %c0_12 = arith.constant 0 : index
    %12 = vector.load %arg6[%c0_11, %c0_12] : memref<128x128xf32, #tpu.memory_space<vmem>>, vector<128x128xf32>
    %cst_13 = arith.constant dense<0.000000e+00> : vector<8x128xf32>
    %13 = tpu.matmul %11, %12, %cst_13 {dimension_numbers = #tpu.dot_dimension_numbers<[1], [0], [0], [1], [0, 0, 1, 1], [], []>} : vector<8x128xf32>, vector<128x128xf32>, vector<8x128xf32> -> vector<8x128xf32>
    %c0_14 = arith.constant 0 : index
    %c0_15 = arith.constant 0 : index
    %14 = vector.load %arg7[%c0_14, %c0_15] : memref<1x128xf32, #tpu.memory_space<vmem>>, vector<1x128xf32>
    %15 = vector.broadcast %14 : vector<1x128xf32> to vector<8x128xf32>
    %16 = arith.addf %13, %15 : vector<8x128xf32>
    %cst_16 = arith.constant 0.000000e+00 : f32
    %17 = vector.broadcast %cst_16 : f32 to vector<8x128xf32>
    %18 = arith.maximumf %16, %17 : vector<8x128xf32>
    %c0_17 = arith.constant 0 : index
    %c0_18 = arith.constant 0 : index
    %19 = vector.load %arg8[%c0_17, %c0_18] : memref<1x128xf32, #tpu.memory_space<vmem>>, vector<1x128xf32>
    %20 = vector.broadcast %19 : vector<1x128xf32> to vector<8x128xf32>
    %21 = arith.mulf %18, %20 : vector<8x128xf32>
    %cst_19 = arith.constant dense<0.000000e+00> : vector<8xf32>
    %22 = vector.multi_reduction <add>, %21, %cst_19 [1] : vector<8x128xf32> to vector<8xf32>
    %23 = vector.shape_cast %22 : vector<8xf32> to vector<8x1xf32>
    %c0_20 = arith.constant 0 : index
    %c0_21 = arith.constant 0 : index
    %24 = vector.load %arg9[%c0_20, %c0_21] : memref<1x1xf32, #tpu.memory_space<vmem>>, vector<1x1xf32>
    %25 = vector.broadcast %24 : vector<1x1xf32> to vector<8x1xf32>
    %26 = arith.addf %23, %25 : vector<8x1xf32>
    %c0_22 = arith.constant 0 : index
    %c0_23 = arith.constant 0 : index
    %27 = vector.load %arg10[%c0_22, %c0_23] : memref<8x1xf32, #tpu.memory_space<vmem>>, vector<8x1xf32>
    tpu.vector_store %arg10[%c0_22, %c0_23], %26 {strides = array<i32>} : memref<8x1xf32, #tpu.memory_space<vmem>>, vector<8x1xf32>,
    return
  }
  func.func @transform_0(%arg0: i32) -> (i32, i32) {
    %c0_i32 = arith.constant 0 : i32
    %c0_i32_0 = arith.constant 0 : i32
    return %arg0, %c0_i32 : i32, i32
  }
  func.func @transform_1(%arg0: i32) -> (i32, i32) {
    %c0_i32 = arith.constant 0 : i32
    %c0_i32_0 = arith.constant 0 : i32
    return %arg0, %c0_i32 : i32, i32
  }
  func.func @transform_2(%arg0: i32) -> (i32, i32) {
    %c0_i32 = arith.constant 0 : i32
    %c0_i32_0 = arith.constant 0 : i32
    %c0_i32_1 = arith.constant 0 : i32
    return %c0_i32, %c0_i32_0 : i32, i32
  }
  func.func @transform_3(%arg0: i32) -> (i32, i32) {
    %c0_i32 = arith.constant 0 : i32
    %c0_i32_0 = arith.constant 0 : i32
    %c0_i32_1 = arith.constant 0 : i32
    return %c0_i32, %c0_i32_0 : i32, i32
  }
  func.func @transform_4(%arg0: i32) -> (i32, i32) {
    %c0_i32 = arith.constant 0 : i32
    %c0_i32_0 = arith.constant 0 : i32
    %c0_i32_1 = arith.constant 0 : i32
    return %c0_i32, %c0_i32_0 : i32, i32
  }
  func.func @transform_5(%arg0: i32) -> (i32, i32) {
    %c0_i32 = arith.constant 0 : i32
    %c0_i32_0 = arith.constant 0 : i32
    %c0_i32_1 = arith.constant 0 : i32
    return %c0_i32, %c0_i32_0 : i32, i32
  }
  func.func @transform_6(%arg0: i32) -> (i32, i32) {
    %c0_i32 = arith.constant 0 : i32
    %c0_i32_0 = arith.constant 0 : i32
    %c0_i32_1 = arith.constant 0 : i32
    return %c0_i32, %c0_i32_0 : i32, i32
  }
  func.func @transform_7(%arg0: i32) -> (i32, i32) {
    %c0_i32 = arith.constant 0 : i32
    %c0_i32_0 = arith.constant 0 : i32
    %c0_i32_1 = arith.constant 0 : i32
    return %c0_i32, %c0_i32_0 : i32, i32
  }
  func.func @transform_8(%arg0: i32) -> (i32, i32) {
    %c0_i32 = arith.constant 0 : i32
    %c0_i32_0 = arith.constant 0 : i32
    %c0_i32_1 = arith.constant 0 : i32
    return %c0_i32, %c0_i32_0 : i32, i32
  }
  func.func @transform_9(%arg0: i32) -> (i32, i32) {
    %c0_i32 = arith.constant 0 : i32
    %c0_i32_0 = arith.constant 0 : i32
    return %arg0, %c0_i32 : i32, i32
  }
}

</mosaic_0001>

<bundles_post_ra>
// kernel: tpu_custom_call.1
= control target key start
LH: loop header
LB: loop body
LE: loop exit
PB: predicated region body
PF: predicated region fallthrough
CT: control target
= control target key end

     0   :  { %s334_s0 = inlined_call_operand.vmem [shape: f32[8,8], index: 0, kind: input, shape index: {}]   ;;  %s335_s1 = inlined_call_operand.vmem [shape: f32[8,2], index: 1, kind: input, shape index: {}]   ;;  %s336_s2 = inlined_call_operand.hbm [shape: f32[8,128], index: 2, kind: input, shape index: {}]   ;;  %s337_s3 = inlined_call_operand.vmem [shape: f32[2,128], index: 3, kind: input, shape index: {}]   ;;  %s338_s4 = inlined_call_operand.vmem [shape: f32[1,128], index: 4, kind: input, shape index: {}]   ;;  %s339_s5 = inlined_call_operand.hbm [shape: f32[128,128], index: 5, kind: input, shape index: {}]   ;;  %s340_s6 = inlined_call_operand.vmem [shape: f32[1,128], index: 6, kind: input, shape index: {}]   ;;  %s341_s7 = inlined_call_operand.vmem [shape: f32[1,128], index: 7, kind: input, shape index: {}]   ;;  %s342_s8 = inlined_call_operand.<no memory space> [shape: f32[1,1], index: 8, kind: input, shape index: {}]   ;;  %s343_s9 = inlined_call_operand.vmem [shape: f32[8,1], index: 9, kind: output, shape index: {}]  }
   0x1   :  { %v14_v0 = vstv %s342_s8 }
   0x2   :  { %15 = vst [vmem:[#allocation2] sm:$0x1] %v14_v0 }
   0x3   :  { %16 = vsyncpa [#allocation4], 0  ;;  %s27_s13 = sshll.u32 %s336_s2, 4  ;;  %s28_s13 = int_to_ptr.hbm [resolvable:$true] %s27_s13 }
   0x4   :  { %17 = vsyncpa [#allocation6], 0  ;;  %s250_s14 = smov [#allocation3]   ;;  %s41_s18 = sshll.u32 %s339_s5, 4  ;;  %s42_s18 = int_to_ptr.hbm [resolvable:$true] %s41_s18 }
   0x5   :  { %s29_s15 = sshll.u32 %s250_s14, 4  ;;  %s251_s19 = smov [#allocation5]   ;;  %s30_s15 = int_to_ptr.vmem [resolvable:$true] %s29_s15 }
   0x6   :  { %32 = dma.hbm_to_vmem [thread:$0]  %s28_s13, 128, %s30_s15, [#allocation4]  }
   0x7   :  { %s43_s20 = sshll.u32 %s251_s19, 4  ;;  %s252_s8 = smov 128   ;;  %s44_s20 = int_to_ptr.vmem [resolvable:$true] %s43_s20 }
   0x8   :  { %s253_s21 = smov 8  }
   0x9   :  { %49 = dma.hbm_to_vmem [thread:$0]  %s42_s18, 2048, %s44_s20, [#allocation6], %s252_s8, %s252_s8, %s253_s21  }
   0xa   :  { %246 = dma.done.wait [#allocation4], 128  }
   0xb   :  { %247 = vsyncadd [#allocation4], 4294967168 }
   0xc   :  { %248 = dma.done.wait [#allocation6], 2048  }
   0xd   :  { %249 = vsyncadd [#allocation6], 4294965248  ;;  %vm72_vm0 = vcmask 1041408   ;;  %vm68_vm1 = vcmask 15360   ;;  %vm96_vm2 = vcmask 64512   ;;  %v65_v2 = vld [vmem:[#allocation3] sm:$0xff] }
   0xe   :  { %v67_v1 = vld [vmem:[%s337_s3] sm:$0x3]  ;;  %115 = vmatpush.msra.mxu1 %v65_v2  ;;  %v139_v7 = vld [vmem:[#allocation5 + $0x68] sm:$0xff]  ;;  %v138_v8 = vld [vmem:[#allocation5 + $0x60] sm:$0xff]  ;;  %vm179_vm3 = vcmask 7168  }
   0xf   :  { %v66_v3 = vld [vmem:[%s335_s1] sm:$0xff]  ;;  %187 = vmatpush.msk.msra.mxu0 %vm72_vm0, %v67_v1  ;;  %v135_v11 = vld [vmem:[#allocation5 + $0x48] sm:$0xff]  ;;  %v134_v12 = vld [vmem:[#allocation5 + $0x40] sm:$0xff] }
  0x10   :  { %v64_v4 = vld [vmem:[%s334_s0] sm:$0xff]  ;;  %188 = vmatmul.msk.f32.vlgmr.msra.gmra.mxu0 %vm68_vm1, %v66_v3  ;;  %v131_v15 = vld [vmem:[#allocation5 + $0x28] sm:$0xff]  ;;  %v130_v16 = vld [vmem:[#allocation5 + $0x20] sm:$0xff] }
  0x11   :  { %v141_v5 = vld [vmem:[#allocation5 + $0x78] sm:$0xff]  ;;  %189 = vmatmul.msk.f32.vlgmr.msra.gmra.mxu1 %vm96_vm2, %v64_v4  ;;  %v140_v6 = vld [vmem:[#allocation5 + $0x70] sm:$0xff]  ;;  %v127_v19 = vld [vmem:[#allocation5 + $0x8] sm:$0xff] }
  0x12   :  { %146 = vmatpush.msra.mxu2 %v141_v5  ;;  %v137_v9 = vld [vmem:[#allocation5 + $0x58] sm:$0xff]  ;;  %v136_v10 = vld [vmem:[#allocation5 + $0x50] sm:$0xff]  ;;  %v126_v20 = vld [vmem:[#allocation5] sm:$0xff] }
  0x13   :  { %v133_v13 = vld [vmem:[#allocation5 + $0x38] sm:$0xff]  ;;  %v132_v14 = vld [vmem:[#allocation5 + $0x30] sm:$0xff] }
  0x14   :  { %147 = vmatpush.msra.mxu2 %v140_v6  ;;  %v129_v17 = vld [vmem:[#allocation5 + $0x18] sm:$0xff]  ;;  %v128_v18 = vld [vmem:[#allocation5 + $0x10] sm:$0xff] }
  0x15   :  { %v194_v21 = vld [vmem:[%s338_s4] ss:$0 sm:$0xff] }
  0x16   :  { %148 = vmatpush.msra.mxu2 %v139_v7  ;;  %v195_v27 = vld [vmem:[%s340_s6] ss:$0 sm:$0xff] }
  0x17   :  { %v196_v30 = vld [vmem:[%s341_s7] ss:$0 sm:$0xff] }
  0x18   :  { %149 = vmatpush.msra.mxu2 %v138_v8  ;;  %v197_v33 = vld [vmem:[#allocation2] ss:$0 sm:$0xff] }
  0x1a   :  { %150 = vmatpush.msra.mxu2 %v137_v9 }
  0x1c   :  { %151 = vmatpush.msra.mxu2 %v136_v10 }
  0x1e   :  { %152 = vmatpush.msra.mxu2 %v135_v11 }
  0x20   :  { %153 = vmatpush.msra.mxu2 %v134_v12 }
  0x22   :  { %154 = vmatpush.msra.mxu2 %v133_v13 }
  0x24   :  { %155 = vmatpush.msra.mxu2 %v132_v14 }
  0x26   :  { %156 = vmatpush.msra.mxu2 %v131_v15 }
  0x28   :  { %157 = vmatpush.msra.mxu2 %v130_v16 }
  0x2a   :  { %158 = vmatpush.msra.mxu2 %v129_v17 }
  0x2c   :  { %159 = vmatpush.msra.mxu2 %v128_v18 }
  0x2e   :  { %160 = vmatpush.msra.mxu2 %v127_v19 }
  0x30   :  { %161 = vmatpush.msra.mxu2 %v126_v20 }
  0x8d   :  { %v93_v22 = vpop.f32.mrf.mxu0 }
  0x8e   :  { %v117_v23 = vpop.f32.mrf.mxu1 }
  0x8f   :  { %v118_v24 = vadd.f32 %v117_v23, %v93_v22 }
  0x91   :  { %v124_v25 = vadd.f32 %v194_v21, %v118_v24 }
  0x93   :  { %v125_v26 = vmax.f32 %v124_v25, 0.0 }
  0x95   :  { %162 = vmatmul.f32.vlgmr.msra.gmra.mxu2 %v125_v26 }
 0x118   :  { %v163_v28 = vpop.f32.mrf.mxu2 }
 0x119   :  { %v164_v29 = vadd.f32 %v195_v27, %v163_v28 }
 0x11b   :  { %v166_v31 = vmax.f32 %v164_v29, 0.0 }
 0x11d   :  { %v171_v32 = vmul.f32 %v196_v30, %v166_v31 }
 0x11f   :  { %172 = vadd.xlane.f32.xlu0 %v171_v32 }
 0x192   :  { %v173_v34 = vpop.xlane.xlu0 %172 }
 0x193   :  { %v178_v35 = vadd.f32 %v197_v33, %v173_v34 }
 0x195   :  { %180 = vst.msk [vmem:[%s343_s9] sm:$0xff] %vm179_vm3, %v178_v35 }
 0x196   :  { %185 = vsyncpa [#allocation4], 1 }
 0x197   :  { %186 = vsyncpa [#allocation6], 1 }

</bundles_post_ra>
